<compile_context>
chip_gen: v5e
topology: v5e:2x2
jax: 0.10.0
libtpu: 0.0.40
codegen_flags: <defaults>
</compile_context>

<pallas_src>
import functools
import math

import jax
import jax.numpy as jnp
from jax import lax
from jax.experimental import pallas as pl
from jax.experimental.pallas import tpu as pltpu

F32 = jnp.float32
BF16 = jnp.bfloat16
BN_EPS = 1e-5
LN_EPS = 1e-5                           # nn.Transformer layer_norm_eps default
BN_INV = float(1.0 / math.sqrt(1.0 + BN_EPS))
DIM_FF = 2048                           # nn.Transformer default dim_feedforward

_VMEM_LIMIT = 48 * 1024 * 1024          # <= 64 MiB physical on v7x, ample on v5e/v6e
_K_SINGLE_MAX = 4608                    # largest K kept as a single reduction step


# ---------------------------------------------------------------------------
# tiling helpers (deterministic -> weights can be pre-padded at init time)
# ---------------------------------------------------------------------------
def _round_up(v, m):
    return (v + m - 1) // m * m


def _m_tile(M):
    if M <= 512:
        Mp = _round_up(M, 16)            # bf16 sublane pack (16, 128)
        return Mp, Mp
    return _round_up(M, 256), 256


def _k_tile(K):
    if K <= _K_SINGLE_MAX:
        return K, K                      # single K step, no padding needed
    return _round_up(K, 512), 512


def _n_tile(N):
    if N <= 512:
        return N, N                      # single N step, no padding needed
    return _round_up(N, 512), 512


# ---------------------------------------------------------------------------
# Generic tiled matmul kernel:  out = relu?( x @ w + bias [+ residual] )
#   x, w bf16 on the MXU, f32 accumulation in VMEM scratch, bf16/f32 output.
# ---------------------------------------------------------------------------
def _mm_kernel(x_ref, w_ref, b_ref, o_ref, acc_ref, *, relu):
    @pl.when(pl.program_id(2) == 0)
    def _():
        acc_ref[...] = jnp.zeros_like(acc_ref)

    acc_ref[...] += jnp.dot(x_ref[...], w_ref[...],
                            preferred_element_type=jnp.float32)

    @pl.when(pl.program_id(2) == pl.num_programs(2) - 1)
    def _():
        y = acc_ref[...] + b_ref[...]
        if relu:
            y = jnp.maximum(y, 0.0)
        o_ref[...] = y.astype(o_ref.dtype)


def _mm_res_kernel(x_ref, w_ref, b_ref, r_ref, o_ref, acc_ref, *, relu):
    @pl.when(pl.program_id(2) == 0)
    def _():
        acc_ref[...] = jnp.zeros_like(acc_ref)

    acc_ref[...] += jnp.dot(x_ref[...], w_ref[...],
                            preferred_element_type=jnp.float32)

    @pl.when(pl.program_id(2) == pl.num_programs(2) - 1)
    def _():
        y = acc_ref[...] + b_ref[...] + r_ref[...].astype(jnp.float32)
        if relu:
            y = jnp.maximum(y, 0.0)
        o_ref[...] = y.astype(o_ref.dtype)


@functools.partial(jax.jit,
                   static_argnames=("relu", "has_res", "out_dtype", "n_logical"))
def _matmul_call(x, wp, bp, residual, *, relu, has_res, out_dtype, n_logical):
    M, K = x.shape
    Kp, Np = wp.shape                                  # weight pre-padded at init
    Mp, tm = _m_tile(M)
    tk = Kp if Kp <= _K_SINGLE_MAX else 512
    tn = Np if Np <= 512 else 512

    xq = x.astype(BF16)
    if Mp != M or Kp != K:                             # rare (tiny M / ragged K)
        xq = jnp.zeros((Mp, Kp), BF16).at[:M, :K].set(xq)

    in_specs = [
        pl.BlockSpec((tm, tk), lambda i, j, k: (i, k)),
        pl.BlockSpec((tk, tn), lambda i, j, k: (k, j)),
        pl.BlockSpec((1, tn), lambda i, j, k: (0, j)),
    ]
    args = [xq, wp, bp]
    if has_res:
        r = residual.astype(BF16)
        if Mp != M or Np != n_logical:
            r = jnp.zeros((Mp, Np), BF16).at[:M, :n_logical].set(r)
        in_specs.append(pl.BlockSpec((tm, tn), lambda i, j, k: (i, j)))
        args.append(r)
        kern = functools.partial(_mm_res_kernel, relu=relu)
    else:
        kern = functools.partial(_mm_kernel, relu=relu)

    out = pl.pallas_call(
        kern,
        out_shape=jax.ShapeDtypeStruct((Mp, Np), out_dtype),
        grid=(Mp // tm, Np // tn, Kp // tk),
        in_specs=in_specs,
        out_specs=pl.BlockSpec((tm, tn), lambda i, j, k: (i, j)),
        scratch_shapes=[pltpu.VMEM((tm, tn), jnp.float32)],
        compiler_params=pltpu.CompilerParams(
            dimension_semantics=("parallel", "parallel", "arbitrary"),
            vmem_limit_bytes=_VMEM_LIMIT),
    )(*args)
    if Mp != M or Np != n_logical:
        out = out[:M, :n_logical]
    return out


def pallas_matmul(x, wspec, residual=None, relu=False, out_dtype=BF16):
    return _matmul_call(x, wspec["w"], wspec["b"], residual,
                        relu=relu, has_res=residual is not None,
                        out_dtype=out_dtype, n_logical=wspec["n"])


# ---------------------------------------------------------------------------
# Weight preparation: reshape / pad / cast ONCE at init time
# ---------------------------------------------------------------------------
def _prep_matmul_weight(w2d, bias=None):
    K, N = w2d.shape
    Kp, _ = _k_tile(K)
    Np, _ = _n_tile(N)
    wq = w2d.astype(BF16)
    if (Kp, Np) != (K, N):
        wq = jnp.zeros((Kp, Np), BF16).at[:K, :N].set(wq)
    b = jnp.zeros((N,), F32) if bias is None else jnp.asarray(bias, F32).reshape(N)
    bp = jnp.zeros((1, Np), F32).at[0, :N].set(b)
    return {"w": wq, "b": bp, "n": N}


def _prep_conv(w_hwio, bias=None):
    kh, kw, cin, cout = w_hwio.shape
    spec = _prep_matmul_weight(w_hwio.reshape(kh * kw * cin, cout), bias)
    spec.update(kh=kh, kw=kw, cin=cin, cout=cout)
    return spec


# ---------------------------------------------------------------------------
# Conv / pool glue (im2col in plain JAX, matmul + fused epilogue in Pallas)
# ---------------------------------------------------------------------------
def _im2col(x, kh, kw, stride, padding):
    # TODO(synk): at real image resolutions, stream the (kh,kw) taps through the
    # matmul K grid instead of materialising the im2col patch matrix in HBM.
    n, h, w, c = x.shape
    xp = x if padding == 0 else jnp.pad(
        x, ((0, 0), (padding, padding), (padding, padding), (0, 0)))
    oh = (h + 2 * padding - kh) // stride + 1
    ow = (w + 2 * padding - kw) // stride + 1
    if kh == 1 and kw == 1 and stride == 1:
        return xp, oh, ow                              # 1x1 conv: zero-copy path
    cols = []
    for i in range(kh):
        for j in range(kw):
            cols.append(xp[:, i:i + (oh - 1) * stride + 1:stride,
                           j:j + (ow - 1) * stride + 1:stride, :])
    patches = cols[0] if len(cols) == 1 else jnp.concatenate(cols, axis=-1)
    return patches, oh, ow


@functools.partial(jax.jit, static_argnames=("kh", "kw", "cout", "stride",
                                             "padding", "relu", "has_res",
                                             "out_dtype"))
def _conv2d_call(x, w, b, residual, *, kh, kw, cout, stride, padding, relu,
                 has_res, out_dtype):
    n, _, _, cin = x.shape
    patches, oh, ow = _im2col(x, kh, kw, stride, padding)
    m = n * oh * ow
    res2d = residual.reshape(m, cout) if has_res else None
    y = _matmul_call(patches.reshape(m, kh * kw * cin), w, b, res2d,
                     relu=relu, has_res=has_res, out_dtype=out_dtype,
                     n_logical=cout)
    return y.reshape(n, oh, ow, cout)


def conv2d(x, cspec, residual=None, stride=1, padding=0, relu=False,
           out_dtype=BF16):
    return _conv2d_call(x, cspec["w"], cspec["b"], residual,
                        kh=cspec["kh"], kw=cspec["kw"], cout=cspec["cout"],
                        stride=stride, padding=padding, relu=relu,
                        has_res=residual is not None, out_dtype=out_dtype)


@jax.jit
def maxpool2d_3x3_s2(x):
    # nn.MaxPool2d(3, stride=2, padding=1) — XLA reduce_window, bf16 in/out.
    return lax.reduce_window(x, -jnp.inf, lax.max,
                             window_dimensions=(1, 3, 3, 1),
                             window_strides=(1, 2, 2, 1),
                             padding=((0, 0), (1, 1), (1, 1), (0, 0)))


# ---------------------------------------------------------------------------
# ResNet-50 backbone (eval mode; BN pre-folded into the conv weights)
# ---------------------------------------------------------------------------
def bottleneck_forward(x, blk):
    identity = x
    out = conv2d(x, blk["c1"], relu=True)
    out = conv2d(out, blk["c2"], stride=blk["stride"], padding=1, relu=True)
    if "down" in blk:
        identity = conv2d(x, blk["down"], stride=blk["stride"], relu=False)
    # conv3 with the residual add + ReLU fused into the matmul epilogue
    out = conv2d(out, blk["c3"], residual=identity, relu=True)
    return out


def resnet50_forward(x, bp):
    x = conv2d(x, bp["conv1"], stride=2, padding=3, relu=True)
    x = maxpool2d_3x3_s2(x)
    for layer in bp["layers"]:
        for blk in layer:
            x = bottleneck_forward(x, blk)
    return x


# ---------------------------------------------------------------------------
# Fused transformer blocks
# ---------------------------------------------------------------------------
def _attn_block_kernel(x_ref, mem_ref, wi_ref, bi_ref, wo_ref, bo_ref,
                       g_ref, be_ref, o_ref, *, nheads, eps):
    # QKV proj + per-head attention + out proj + residual + LayerNorm, all f32.
    # TODO(synk): add a kv-tile grid axis (flash pattern) if token counts ever
    # grow beyond a few thousand; at (H/32)*(W/32) tokens full residency is fine.
    x = x_ref[...].astype(jnp.float32)
    mem = mem_ref[...].astype(jnp.float32)
    w_in = wi_ref[...]
    b_in = bi_ref[...]
    E = x.shape[-1]
    q = jnp.dot(x, w_in[:, :E], preferred_element_type=jnp.float32) + b_in[:, :E]
    k = jnp.dot(mem, w_in[:, E:2 * E],
                preferred_element_type=jnp.float32) + b_in[:, E:2 * E]
    v = jnp.dot(mem, w_in[:, 2 * E:],
                preferred_element_type=jnp.float32) + b_in[:, 2 * E:]

    dh = E // nheads
    scale = 1.0 / math.sqrt(dh)
    heads = []
    for h in range(nheads):                            # static unroll, 2-D ops only
        qh = q[:, h * dh:(h + 1) * dh] * scale
        kh = k[:, h * dh:(h + 1) * dh]
        vh = v[:, h * dh:(h + 1) * dh]
        s = lax.dot_general(qh, kh, (((1,), (1,)), ((), ())),
                            preferred_element_type=jnp.float32)
        s = s - jnp.max(s, axis=-1, keepdims=True)
        p = jnp.exp(s)
        p = p / jnp.sum(p, axis=-1, keepdims=True)
        heads.append(jnp.dot(p, vh, preferred_element_type=jnp.float32))
    attn = jnp.concatenate(heads, axis=-1)

    y = jnp.dot(attn, wo_ref[...], preferred_element_type=jnp.float32) + bo_ref[...]
    y = x + y                                          # residual (dropout = eval no-op)
    mu = jnp.mean(y, axis=-1, keepdims=True)
    var = jnp.mean(jnp.square(y - mu), axis=-1, keepdims=True)
    o_ref[...] = (y - mu) * lax.rsqrt(var + eps) * g_ref[...] + be_ref[...]


@functools.partial(jax.jit, static_argnames=("nheads",))
def attention_block(x, mem, p, *, nheads):
    Lq, E = x.shape
    Lk = mem.shape[0]
    return pl.pallas_call(
        functools.partial(_attn_block_kernel, nheads=nheads, eps=LN_EPS),
        out_shape=jax.ShapeDtypeStruct((Lq, E), F32),
        grid=(1,),
        in_specs=[pl.BlockSpec((Lq, E), lambda i: (0, 0)),
                  pl.BlockSpec((Lk, E), lambda i: (0, 0)),
                  pl.BlockSpec((E, 3 * E), lambda i: (0, 0)),
                  pl.BlockSpec((1, 3 * E), lambda i: (0, 0)),
                  pl.BlockSpec((E, E), lambda i: (0, 0)),
                  pl.BlockSpec((1, E), lambda i: (0, 0)),
                  pl.BlockSpec((1, E), lambda i: (0, 0)),
                  pl.BlockSpec((1, E), lambda i: (0, 0))],
        out_specs=pl.BlockSpec((Lq, E), lambda i: (0, 0)),
        compiler_params=pltpu.CompilerParams(
            dimension_semantics=("arbitrary",),
            vmem_limit_bytes=_VMEM_LIMIT),
    )(x, mem, p["w_in"], p["b_in"], p["w_out"], p["b_out"],
      p["ln_g"], p["ln_b"])


def _ffn_block_kernel(x_ref, w1_ref, b1_ref, w2_ref, b2_ref, g_ref, be_ref,
                      o_ref, *, eps):
    x = x_ref[...]
    h = jnp.dot(x, w1_ref[...], preferred_element_type=jnp.float32) + b1_ref[...]
    h = jnp.maximum(h, 0.0)
    y = jnp.dot(h, w2_ref[...], preferred_element_type=jnp.float32) + b2_ref[...]
    y = x + y                                          # residual
    mu = jnp.mean(y, axis=-1, keepdims=True)
    var = jnp.mean(jnp.square(y - mu), axis=-1, keepdims=True)
    o_ref[...] = (y - mu) * lax.rsqrt(var + eps) * g_ref[...] + be_ref[...]


@jax.jit
def ffn_block(x, p):
    M, E = x.shape
    F = p["w1"].shape[1]
    return pl.pallas_call(
        functools.partial(_ffn_block_kernel, eps=LN_EPS),
        out_shape=jax.ShapeDtypeStruct((M, E), F32),
        grid=(1,),
        in_specs=[pl.BlockSpec((M, E), lambda i: (0, 0)),
                  pl.BlockSpec((E, F), lambda i: (0, 0)),
                  pl.BlockSpec((1, F), lambda i: (0, 0)),
                  pl.BlockSpec((F, E), lambda i: (0, 0)),
                  pl.BlockSpec((1, E), lambda i: (0, 0)),
                  pl.BlockSpec((1, E), lambda i: (0, 0)),
                  pl.BlockSpec((1, E), lambda i: (0, 0))],
        out_specs=pl.BlockSpec((M, E), lambda i: (0, 0)),
        compiler_params=pltpu.CompilerParams(
            dimension_semantics=("arbitrary",),
            vmem_limit_bytes=_VMEM_LIMIT),
    )(x, p["w1"], p["b1"], p["w2"], p["b2"], p["ln_g"], p["ln_b"])


def _ln_kernel(x_ref, g_ref, b_ref, o_ref, *, eps):
    x = x_ref[...]
    mu = jnp.mean(x, axis=-1, keepdims=True)
    var = jnp.mean(jnp.square(x - mu), axis=-1, keepdims=True)
    o_ref[...] = (x - mu) * lax.rsqrt(var + eps) * g_ref[...] + b_ref[...]


@jax.jit
def pallas_layernorm(x, gamma, beta):
    M, D = x.shape
    return pl.pallas_call(
        functools.partial(_ln_kernel, eps=LN_EPS),
        out_shape=jax.ShapeDtypeStruct((M, D), F32),
        grid=(1,),
        in_specs=[pl.BlockSpec((M, D), lambda i: (0, 0)),
                  pl.BlockSpec((1, D), lambda i: (0, 0)),
                  pl.BlockSpec((1, D), lambda i: (0, 0))],
        out_specs=pl.BlockSpec((M, D), lambda i: (0, 0)),
        compiler_params=pltpu.CompilerParams(
            dimension_semantics=("arbitrary",)),
    )(x, gamma, beta)


def encoder_layer_forward(src, p, nheads):
    src = attention_block(src, src, p["self_attn"], nheads=nheads)
    src = ffn_block(src, p["ffn"])
    return src


def decoder_layer_forward(tgt, memory, p, nheads):
    tgt = attention_block(tgt, tgt, p["self_attn"], nheads=nheads)
    tgt = attention_block(tgt, memory, p["cross_attn"], nheads=nheads)
    tgt = ffn_block(tgt, p["ffn"])
    return tgt


# ---------------------------------------------------------------------------
# Full forward (mirrors crowdcounting_tr.forward, eval mode, batch 1)
# ---------------------------------------------------------------------------
def crowdcounting_tr_forward(params, inputs_nchw, nheads):
    b, _, h_in, w_in = inputs_nchw.shape
    assert b == 1, "only batch size 1 supported (same as the PyTorch module)"
    assert params["out_head"]["n"] == (h_in // 8) * (w_in // 8), \
        "num_classes must equal (H//8)*(W//8) for the final .view()"

    x = jnp.transpose(inputs_nchw, (0, 2, 3, 1)).astype(BF16)     # NCHW -> NHWC

    x = resnet50_forward(x, params["backbone"])                   # (1, Hf, Wf, 2048) bf16
    h = conv2d(x, params["conv_head"], out_dtype=F32)             # 1x1 conv -> hidden
    _, Hf, Wf, E = h.shape
    half = E // 2

    col = params["col_embed"][:Wf]                                # (Wf, E/2)
    row = params["row_embed"][:Hf]                                # (Hf, E/2)
    pos = jnp.concatenate([
        jnp.broadcast_to(col[None, :, :], (Hf, Wf, half)),
        jnp.broadcast_to(row[:, None, :], (Hf, Wf, half)),
    ], axis=-1).reshape(Hf * Wf, E)

    tokens = h.reshape(Hf * Wf, E)                                # h.flatten(2).permute(2,0,1)
    src = pos + 0.1 * tokens                                      # plain jnp (XLA fuses)

    memory = src
    for p in params["enc_layers"]:
        memory = encoder_layer_forward(memory, p, nheads)
    memory = pallas_layernorm(memory, *params["enc_norm"])

    out = params["query_pos"]                                     # (1, E) -> tgt
    for p in params["dec_layers"]:
        out = decoder_layer_forward(out, memory, p, nheads)
    out = pallas_layernorm(out, *params["dec_norm"])

    out = pallas_matmul(out.astype(BF16), params["out_head"], out_dtype=F32)
    out = out.reshape(b, h_in // 8, w_in // 8)                    # .view(b, h//8, w//8)
    return out[:, None, :, :]                                     # .unsqueeze(1)


# ---------------------------------------------------------------------------
# Deterministic synthetic parameter initialisation
# ---------------------------------------------------------------------------
def _xavier(key, fan_in, fan_out):
    a = math.sqrt(6.0 / (fan_in + fan_out))
    return jax.random.uniform(key, (fan_in, fan_out), F32, -a, a)


def init_params(key, hidden_dim, nheads, n_enc, n_dec, num_classes):
    keys = iter(jax.random.split(key, 512))
    nk = lambda: next(keys)
    E = hidden_dim

    def conv_spec(kh, kw, cin, cout, fold_bn=True, bias=None):
        w = 0.01 * jax.random.normal(nk(), (kh, kw, cin, cout), F32)
        if fold_bn:
            # eval-mode BN with fresh running stats == scale 1/sqrt(1+eps), shift 0
            w = w * BN_INV
        return _prep_conv(w, bias)

    backbone = {"conv1": conv_spec(7, 7, 3, 64)}
    cfg = [(64, 3, 1), (128, 4, 2), (256, 6, 2), (512, 3, 2)]
    inplanes, layers = 64, []
    for planes, nblocks, stride in cfg:
        layer = []
        for bi in range(nblocks):
            s = stride if bi == 0 else 1
            blk = {"stride": s,
                   "c1": conv_spec(1, 1, inplanes, planes),
                   "c2": conv_spec(3, 3, planes, planes),
                   "c3": conv_spec(1, 1, planes, planes * 4)}
            if bi == 0:
                blk["down"] = conv_spec(1, 1, inplanes, planes * 4)
            layer.append(blk)
            inplanes = planes * 4
        layers.append(layer)
    backbone["layers"] = layers

    def mha_params():
        return {"w_in": _xavier(nk(), E, 3 * E),
                "b_in": jnp.zeros((1, 3 * E), F32),
                "w_out": _xavier(nk(), E, E),
                "b_out": jnp.full((1, E), 0.01, F32),
                "ln_g": jnp.ones((1, E), F32),
                "ln_b": jnp.zeros((1, E), F32)}

    def ffn_params():
        return {"w1": _xavier(nk(), E, DIM_FF),
                "b1": jnp.full((1, DIM_FF), 0.01, F32),
                "w2": _xavier(nk(), DIM_FF, E),
                "b2": jnp.full((1, E), 0.01, F32),
                "ln_g": jnp.ones((1, E), F32),
                "ln_b": jnp.zeros((1, E), F32)}

    enc_layers = [{"self_attn": mha_params(), "ffn": ffn_params()}
                  for _ in range(n_enc)]
    dec_layers = [{"self_attn": mha_params(), "cross_attn": mha_params(),
                   "ffn": ffn_params()} for _ in range(n_dec)]

    return {
        "backbone": backbone,
        "conv_head": conv_spec(1, 1, 2048, E, fold_bn=False,
                               bias=jnp.zeros((E,), F32)),        # nn.Conv2d(2048, hidden, 1)
        "enc_layers": enc_layers, "dec_layers": dec_layers,
        "enc_norm": (jnp.ones((1, E), F32), jnp.zeros((1, E), F32)),
        "dec_norm": (jnp.ones((1, E), F32), jnp.zeros((1, E), F32)),
        "out_head": _prep_matmul_weight(_xavier(nk(), E, num_classes),
                                        jnp.full((num_classes,), 0.01, F32)),
        "query_pos": jax.random.uniform(nk(), (1, E), F32),       # torch.rand
        "row_embed": jax.random.uniform(nk(), (50, E // 2), F32),
        "col_embed": jax.random.uniform(nk(), (50, E // 2), F32),
    }


if __name__ == "__main__":
    key = jax.random.PRNGKey(0)
    k_inp, k_par = jax.random.split(key)

    # 64x64 image -> ResNet-50 (/32) -> 2x2x2048 feature map, hidden_dim=32,
    # 4 heads, 2 encoder + 2 decoder layers,
    # num_classes = (64//8)*(64//8) = 64 so the final .view(b, h//8, w//8) works.
    B, H_IN, W_IN = 1, 64, 64
    HIDDEN, NHEADS, N_ENC, N_DEC = 32, 4, 2, 2
    NUM_CLASSES = (H_IN // 8) * (W_IN // 8)

    params = init_params(k_par, HIDDEN, NHEADS, N_ENC, N_DEC, NUM_CLASSES)
    inputs = jax.random.normal(k_inp, (B, 3, H_IN, W_IN), F32)    # NCHW like PyTorch

    out = crowdcounting_tr_forward(params, inputs, NHEADS)
    out = jax.block_until_ready(out)
    assert out.shape == (B, 1, H_IN // 8, W_IN // 8), out.shape
    assert bool(jnp.all(jnp.isfinite(out)))
    print("KERNEL_OK")
</pallas_src>

<mosaic_0001>
module attributes {stable_mosaic.version = 11 : i64} {
  func.func @_mm_kernel(%arg0: i32, %arg1: i32, %arg2: i32, %arg3: memref<256x147xbf16, #tpu.memory_space<vmem>>, %arg4: memref<147x64xbf16, #tpu.memory_space<vmem>>, %arg5: memref<1x64xf32, #tpu.memory_space<vmem>>, %arg6: memref<256x64xbf16, #tpu.memory_space<vmem>>, %arg7: memref<256x64xf32, #tpu.memory_space<vmem>>) attributes {dimension_semantics = [#tpu.dimension_semantics<parallel>, #tpu.dimension_semantics<parallel>, #tpu.dimension_semantics<arbitrary>], iteration_bounds = array<i64: 4, 1, 1>, scalar_prefetch = 0 : i64, scratch_operands = 1 : i64, tpu.core_type = #tpu.core_type<tc>, window_params = [{transform_indices = @transform_0, window_bounds = array<i64: 256, 147>}, {transform_indices = @transform_1, window_bounds = array<i64: 147, 64>}, {transform_indices = @transform_2, window_bounds = array<i64: 1, 64>}, {transform_indices = @transform_3, window_bounds = array<i64: 256, 64>}]} {
    %c0_i32 = arith.constant 0 : i32
    %0 = arith.cmpi eq, %arg2, %c0_i32 : i32
    %1 = arith.extui %0 : i1 to i32
    %c0_i32_0 = arith.constant 0 : i32
    %2 = arith.cmpi ne, %1, %c0_i32_0 : i32
    scf.if %2 {
      %cst_10 = arith.constant 0.000000e+00 : f32
      %12 = vector.broadcast %cst_10 : f32 to vector<256x64xf32>
      %c0_11 = arith.constant 0 : index
      %c0_12 = arith.constant 0 : index
      %13 = vector.load %arg7[%c0_11, %c0_12] : memref<256x64xf32, #tpu.memory_space<vmem>>, vector<256x64xf32>
      tpu.vector_store %arg7[%c0_11, %c0_12], %12 {strides = array<i32>} : memref<256x64xf32, #tpu.memory_space<vmem>>, vector<256x64xf32>,
    } else {
    }
    %c0 = arith.constant 0 : index
    %c0_1 = arith.constant 0 : index
    %3 = vector.load %arg7[%c0, %c0_1] : memref<256x64xf32, #tpu.memory_space<vmem>>, vector<256x64xf32>
    %c0_2 = arith.constant 0 : index
    %c0_3 = arith.constant 0 : index
    %4 = vector.load %arg3[%c0_2, %c0_3] : memref<256x147xbf16, #tpu.memory_space<vmem>>, vector<256x147xbf16>
    %c0_4 = arith.constant 0 : index
    %c0_5 = arith.constant 0 : index
    %5 = vector.load %arg4[%c0_4, %c0_5] : memref<147x64xbf16, #tpu.memory_space<vmem>>, vector<147x64xbf16>
    %cst = arith.constant dense<0.000000e+00> : vector<256x64xf32>
    %6 = tpu.matmul %4, %5, %cst {dimension_numbers = #tpu.dot_dimension_numbers<[1], [0], [0], [1], [0, 0, 1, 1], [], []>} : vector<256x147xbf16>, vector<147x64xbf16>, vector<256x64xf32> -> vector<256x64xf32>
    %7 = arith.addf %3, %6 : vector<256x64xf32>
    %c0_6 = arith.constant 0 : index
    %c0_7 = arith.constant 0 : index
    %8 = vector.load %arg7[%c0_6, %c0_7] : memref<256x64xf32, #tpu.memory_space<vmem>>, vector<256x64xf32>
    tpu.vector_store %arg7[%c0_6, %c0_7], %7 {strides = array<i32>} : memref<256x64xf32, #tpu.memory_space<vmem>>, vector<256x64xf32>,
    %c0_i32_8 = arith.constant 0 : i32
    %9 = arith.cmpi eq, %arg2, %c0_i32_8 : i32
    %10 = arith.extui %9 : i1 to i32
    %c0_i32_9 = arith.constant 0 : i32
    %11 = arith.cmpi ne, %10, %c0_i32_9 : i32
    scf.if %11 {
      %c0_10 = arith.constant 0 : index
      %c0_11 = arith.constant 0 : index
      %12 = vector.load %arg7[%c0_10, %c0_11] : memref<256x64xf32, #tpu.memory_space<vmem>>, vector<256x64xf32>
      %c0_12 = arith.constant 0 : index
      %c0_13 = arith.constant 0 : index
      %13 = vector.load %arg5[%c0_12, %c0_13] : memref<1x64xf32, #tpu.memory_space<vmem>>, vector<1x64xf32>
      %14 = vector.broadcast %13 : vector<1x64xf32> to vector<256x64xf32>
      %15 = arith.addf %12, %14 : vector<256x64xf32>
      %cst_14 = arith.constant 0.000000e+00 : f32
      %16 = vector.broadcast %cst_14 : f32 to vector<256x64xf32>
      %17 = arith.maximumf %15, %16 : vector<256x64xf32>
      %18 = arith.truncf %17 : vector<256x64xf32> to vector<256x64xbf16>
      %c0_15 = arith.constant 0 : index
      %c0_16 = arith.constant 0 : index
      %19 = vector.load %arg6[%c0_15, %c0_16] : memref<256x64xbf16, #tpu.memory_space<vmem>>, vector<256x64xbf16>
      tpu.vector_store %arg6[%c0_15, %c0_16], %18 {strides = array<i32>} : memref<256x64xbf16, #tpu.memory_space<vmem>>, vector<256x64xbf16>,
    } else {
    }
    return
  }
  func.func @transform_0(%arg0: i32, %arg1: i32, %arg2: i32) -> (i32, i32) {
    %c0_i32 = arith.constant 0 : i32
    return %arg0, %arg2 : i32, i32
  }
  func.func @transform_1(%arg0: i32, %arg1: i32, %arg2: i32) -> (i32, i32) {
    %c0_i32 = arith.constant 0 : i32
    return %arg2, %arg1 : i32, i32
  }
  func.func @transform_2(%arg0: i32, %arg1: i32, %arg2: i32) -> (i32, i32) {
    %c0_i32 = arith.constant 0 : i32
    %c0_i32_0 = arith.constant 0 : i32
    return %c0_i32, %arg1 : i32, i32
  }
  func.func @transform_3(%arg0: i32, %arg1: i32, %arg2: i32) -> (i32, i32) {
    %c0_i32 = arith.constant 0 : i32
    return %arg0, %arg1 : i32, i32
  }
}

</mosaic_0001>

<bundles_post_ra>
// kernel: _matmul_call.1
= control target key start
LH: loop header
LB: loop body
LE: loop exit
PB: predicated region body
PF: predicated region fallthrough
CT: control target
= control target key end

     0   :  { %s1489_s12 = smov 0   ;;  %s1491_s13 = smov 0   ;;  %s1811_s0 = inlined_call_operand.vmem [shape: bf16[1024,147], index: 0, kind: input, shape index: {}]   ;;  %s1812_s1 = inlined_call_operand.vmem [shape: bf16[147,64], index: 1, kind: input, shape index: {}]   ;;  %s1813_s2 = inlined_call_operand.vmem [shape: f32[1,64], index: 2, kind: input, shape index: {}]   ;;  %s1814_s3 = inlined_call_operand.vmem [shape: bf16[1024,64], index: 3, kind: output, shape index: {}]  }
   0x1   :  { %s1493_s14 = smov 0  }
   0x2 LB: > { %s32_s15 = sadd.s32 1, %s1461_s13  ;;  %p1176_p0 = scmp.ge.s32.totalorder %s1465_s14, 1  ;;  %s1465_s14 = sphi %s1493_s14, %s13_s14   ;;  %s1461_s13 = sphi %s1491_s13, %s1816_s13   ;;  %s1457_s12 = sphi %s1489_s12, %s1815_s12  }
   0x3   : > { %p34_p1 = scmp.ge.s32.totalorder %s32_s15, 4  ;;  %p191_p2 = scmp.lt.s32.totalorder %s1465_s14, 5 }
   0x5   : > { %s1818_s15 = smov (%p34_p1, %s32_s15), 0  ;;  %p192_p3 = pnand %p1176_p0, %p191_p2 }
   0x6   : > { %s1177_s20 = sshll.u32 (!%p192_p3), %s1457_s12, 5 }
   0x7   : > { %195 = sbr.rel (%p192_p3) target bundleno = 317 (0x13d), region = 32  ;;  %p236_p4 = scmp.lt.s32.totalorder (!%p192_p3), %s1177_s20, 127 }
   0xc   : > { %v1404_v0 = vld [vmem:[%s1812_s1 + $0x38] sm:$0xff]  ;;  %v387_v1 = vld [vmem:[%s1812_s1 + $0x48] sm:$0x3]  ;;  %vm638_vm0 = vcmask 1040384   ;;  %vm639_vm1 = vcmask 1041408   ;;  %v1403_v3 = vld [vmem:[%s1812_s1 + $0x30] sm:$0xff] }
   0xd   : > { %v569_v2 = vunpack.c.l.b16 %v387_v1  ;;  %645 = vmatpush.bf16.msra.mxu0 %v1404_v0  ;;  %1406 = vmatpush.bf16.msra.mxu2 %v1404_v0  ;;  %v1467_v4 = vmov 65535   ;;  %s1820_s20 = smov (!%p236_p4, %s1177_s20), 127  ;;  %v1402_v9 = vld [vmem:[%s1812_s1 + $0x28] sm:$0xff]  ;;  %v1405_v10 = vld [vmem:[%s1812_s1 + $0x40] sm:$0xff]  ;;  %vm589_vm2 = vcmask 154624   ;;  %v1400_v18 = vld [vmem:[%s1812_s1 + $0x18] sm:$0xff] }
   0xe   : > { %v640_v5 = vsel %vm638_vm0, 4294967295, %v1467_v4  ;;  %s1364_s25 = sshll.u32 %s1820_s20, 3  ;;  %v1401_v14 = vld [vmem:[%s1812_s1 + $0x20] sm:$0xff]  ;;  %v1399_v19 = vld [vmem:[%s1812_s1 + $0x10] sm:$0xff]  ;;  %v1398_v20 = vld [vmem:[%s1812_s1 + $0x8] sm:$0xff]  ;;  %vm272_vm3 = vcmask 523264  }
   0xf   : > { %v579_v6 = vpack.c.b16 %v569_v2, %v569_v2  ;;  %v641_v7 = vsel %vm639_vm1, %v640_v5, 0  ;;  %s1528_s30 = scalar_lea.vmem %s1811_s0, %s1364_s25  ;;  %v1397_v26 = vld [vmem:[%s1812_s1] sm:$0xff]  ;;  %s1181_s19 = sshll.u32 %s1820_s20, 2  ;;  %vm1023_vm4 = vcmask 519168  }
  0x10   : > { %v1365_v11 = vld [vmem:[%s1528_s30 + $0x4] sm:$0xf]  ;;  %v1186_v12 = vld [vmem:[%s1528_s30 + $0x8] sm:$0xf0]  ;;  %v1383_v15 = vld [vmem:[%s1528_s30 + $0x94] sm:$0xf]  ;;  %s1673_s23 = scalar_lea.vmem %s1814_s3, %s1181_s19 }
  0x11   : > { %v643_v8 = vand.u32 %v641_v7, %v579_v6  ;;  %646 = vmatpush.bf16.msra.mxu0 %v1403_v3  ;;  %1407 = vmatpush.bf16.msra.mxu2 %v1403_v3  ;;  %v1189_v13 = vor.u32 %v1365_v11, %v1186_v12  ;;  %v1258_v16 = vld [vmem:[%s1528_s30 + $0x98] sm:$0xf0]  ;;  %v1367_v21 = vld [vmem:[%s1528_s30 + $0x14] sm:$0xf]  ;;  %v1385_v23 = vld [vmem:[%s1528_s30 + $0xa4] sm:$0xf] }
  0x12   : > { %v1261_v17 = vor.u32 %v1383_v15, %v1258_v16  ;;  %v1194_v22 = vld [vmem:[%s1528_s30 + $0x18] sm:$0xf0]  ;;  %v1266_v24 = vld [vmem:[%s1528_s30 + $0xa8] sm:$0xf0]  ;;  %v1184_v27 = vld [vmem:[%s1528_s30] sm:$0xf] }
  0x13   : > { %740 = vmatpush.bf16.msra.mxu1 %v643_v8  ;;  %1414 = vmatpush.bf16.msra.mxu3 %v643_v8  ;;  %v1197_v25 = vor.u32 %v1367_v21, %v1194_v22  ;;  %v1366_v28 = vld [vmem:[%s1528_s30 + $0x4] sm:$0xf0]  ;;  %v1248_v29 = vld [vmem:[%s1528_s30 + $0x80] sm:$0xf]  ;;  %v1269_v31 = vor.u32 %v1385_v23, %v1266_v24  ;;  %v1369_v34 = vld [vmem:[%s1528_s30 + $0x24] sm:$0xf] }
  0x14   : > { %v1382_v30 = vld [vmem:[%s1528_s30 + $0x84] sm:$0xf0]  ;;  %v1185_v32 = vor.u32 %v1366_v28, %v1184_v27  ;;  %v1202_v35 = vld [vmem:[%s1528_s30 + $0x28] sm:$0xf0]  ;;  %v1387_v36 = vld [vmem:[%s1528_s30 + $0xb4] sm:$0xf] }
  0x15   : > { %647 = vmatpush.bf16.msra.mxu0 %v1402_v9  ;;  %1408 = vmatpush.bf16.msra.mxu2 %v1402_v9  ;;  %v1249_v33 = vor.u32 %v1382_v30, %v1248_v29  ;;  %v1274_v37 = vld [vmem:[%s1528_s30 + $0xb8] sm:$0xf0]  ;;  %v1205_v38 = vor.u32 %v1369_v34, %v1202_v35  ;;  %v1192_v39 = vld [vmem:[%s1528_s30 + $0x10] sm:$0xf]  ;;  %v1368_v40 = vld [vmem:[%s1528_s30 + $0x14] sm:$0xf0] }
  0x16   : > { %v1256_v41 = vld [vmem:[%s1528_s30 + $0x90] sm:$0xf]  ;;  %v1384_v42 = vld [vmem:[%s1528_s30 + $0x94] sm:$0xf0]  ;;  %v1277_v43 = vor.u32 %v1387_v36, %v1274_v37  ;;  %v1193_v44 = vor.u32 %v1368_v40, %v1192_v39  ;;  %v1371_v46 = vld [vmem:[%s1528_s30 + $0x34] sm:$0xf] }
  0x17   : > { %741 = vmatpush.bf16.msra.mxu1 %v1405_v10  ;;  %1415 = vmatpush.bf16.msra.mxu3 %v1405_v10  ;;  %v1257_v45 = vor.u32 %v1384_v42, %v1256_v41  ;;  %v1210_v47 = vld [vmem:[%s1528_s30 + $0x38] sm:$0xf0]  ;;  %v1389_v48 = vld [vmem:[%s1528_s30 + $0xc4] sm:$0xf]  ;;  %v1282_v49 = vld [vmem:[%s1528_s30 + $0xc8] sm:$0xf0] }
  0x18   : > { %v1213_v50 = vor.u32 %v1371_v46, %v1210_v47  ;;  %v1200_v51 = vld [vmem:[%s1528_s30 + $0x20] sm:$0xf]  ;;  %v1370_v52 = vld [vmem:[%s1528_s30 + $0x24] sm:$0xf0]  ;;  %v1285_v55 = vor.u32 %v1389_v48, %v1282_v49  ;;  %v1373_v58 = vld [vmem:[%s1528_s30 + $0x44] sm:$0xf] }
  0x19   : > { %648 = vmatpush.bf16.msra.mxu0 %v1401_v14  ;;  %1409 = vmatpush.bf16.msra.mxu2 %v1401_v14  ;;  %v1264_v53 = vld [vmem:[%s1528_s30 + $0xa0] sm:$0xf]  ;;  %v1386_v54 = vld [vmem:[%s1528_s30 + $0xa4] sm:$0xf0]  ;;  %v1201_v56 = vor.u32 %v1370_v52, %v1200_v51  ;;  %v1218_v59 = vld [vmem:[%s1528_s30 + $0x48] sm:$0xf0] }
  0x1a   : > { %1346 = vmatmul.msk.bf16.vlgmr.msra.gmra.mxu1 %vm589_vm2, %v1189_v13  ;;  %1355 = vmatmul.msk.bf16.vlgmr.msra.gmra.mxu3 %vm589_vm2, %v1261_v17  ;;  %v1265_v57 = vor.u32 %v1386_v54, %v1264_v53  ;;  %v1391_v60 = vld [vmem:[%s1528_s30 + $0xd4] sm:$0xf]  ;;  %v1290_v61 = vld [vmem:[%s1528_s30 + $0xd8] sm:$0xf0]  ;;  %v1221_v62 = vor.u32 %v1373_v58, %v1218_v59  ;;  %v1208_v63 = vld [vmem:[%s1528_s30 + $0x30] sm:$0xf] }
  0x1b   : > { %v1372_v0 = vld [vmem:[%s1528_s30 + $0x34] sm:$0xf0]  ;;  %v1272_v1 = vld [vmem:[%s1528_s30 + $0xb0] sm:$0xf]  ;;  %v1293_v3 = vor.u32 %v1391_v60, %v1290_v61  ;;  %v1375_v6 = vld [vmem:[%s1528_s30 + $0x54] sm:$0xf] }
  0x1c   : > { %v1388_v2 = vld [vmem:[%s1528_s30 + $0xb4] sm:$0xf0]  ;;  %v1209_v4 = vor.u32 %v1372_v0, %v1208_v63  ;;  %v1226_v7 = vld [vmem:[%s1528_s30 + $0x58] sm:$0xf0]  ;;  %v1393_v8 = vld [vmem:[%s1528_s30 + $0xe4] sm:$0xf] }
  0x1d   : > { %649 = vmatpush.bf16.msra.mxu0 %v1400_v18  ;;  %1410 = vmatpush.bf16.msra.mxu2 %v1400_v18  ;;  %v1273_v5 = vor.u32 %v1388_v2, %v1272_v1  ;;  %v1298_v9 = vld [vmem:[%s1528_s30 + $0xe8] sm:$0xf0]  ;;  %v1229_v10 = vor.u32 %v1375_v6, %v1226_v7  ;;  %v1216_v11 = vld [vmem:[%s1528_s30 + $0x40] sm:$0xf]  ;;  %v1374_v12 = vld [vmem:[%s1528_s30 + $0x44] sm:$0xf0] }
  0x1e   : > { %v1280_v13 = vld [vmem:[%s1528_s30 + $0xc0] sm:$0xf]  ;;  %v1390_v14 = vld [vmem:[%s1528_s30 + $0xc4] sm:$0xf0]  ;;  %v1301_v15 = vor.u32 %v1393_v8, %v1298_v9  ;;  %v1217_v16 = vor.u32 %v1374_v12, %v1216_v11  ;;  %v1377_v18 = vld [vmem:[%s1528_s30 + $0x64] sm:$0xf] }
  0x1f   : > { %v1281_v17 = vor.u32 %v1390_v14, %v1280_v13  ;;  %v1306_v21 = vld [vmem:[%s1528_s30 + $0xf8] sm:$0xf0]  ;;  %v1224_v23 = vld [vmem:[%s1528_s30 + $0x50] sm:$0xf]  ;;  %v1376_v24 = vld [vmem:[%s1528_s30 + $0x54] sm:$0xf0] }
  0x20   : > { %v1225_v28 = vor.u32 %v1376_v24, %v1224_v23  ;;  %v1379_v30 = vld [vmem:[%s1528_s30 + $0x74] sm:$0xf]  ;;  %v1378_v34 = vld [vmem:[%s1528_s30 + $0x64] sm:$0xf0]  ;;  %v1468_v35 = vmov 0.0  }
  0x21   : > { %650 = vmatpush.bf16.msra.mxu0 %v1399_v19  ;;  %1411 = vmatpush.bf16.msra.mxu2 %v1399_v19  ;;  %v1234_v19 = vld [vmem:[%s1528_s30 + $0x68] sm:$0xf0]  ;;  %273 = vst.msk [vmem:[#allocation2] sm:$0xff] %vm272_vm3, %v1468_v35  ;;  %v1296_v36 = vld [vmem:[%s1528_s30 + $0xe0] sm:$0xf] }
  0x22   : > { %v1237_v22 = vor.u32 %v1377_v18, %v1234_v19  ;;  %v1394_v37 = vld [vmem:[%s1528_s30 + $0xe4] sm:$0xf0]  ;;  %274 = vst.msk [vmem:[#allocation2 + $0x8] sm:$0xff] %vm272_vm3, %v1468_v35  ;;  %v1381_v40 = vld [vmem:[%s1528_s30 + $0x84] sm:$0xf] }
  0x23   : > { %275 = vst.msk [vmem:[#allocation2 + $0x10] sm:$0xff] %vm272_vm3, %v1468_v35  ;;  %v1297_v39 = vor.u32 %v1394_v37, %v1296_v36  ;;  %v1250_v41 = vld [vmem:[%s1528_s30 + $0x88] sm:$0xf0]  ;;  %v1304_v46 = vld [vmem:[%s1528_s30 + $0xf0] sm:$0xf] }
  0x24   : > { %276 = vst.msk [vmem:[#allocation2 + $0x18] sm:$0xff] %vm272_vm3, %v1468_v35  ;;  %v1253_v42 = vor.u32 %v1381_v40, %v1250_v41  ;;  %v1396_v47 = vld [vmem:[%s1528_s30 + $0xf4] sm:$0xf0] }
  0x25   : > { %651 = vmatpush.bf16.msra.mxu0 %v1398_v20  ;;  %1412 = vmatpush.bf16.msra.mxu2 %v1398_v20  ;;  %v1395_v20 = vld [vmem:[%s1528_s30 + $0xf4] sm:$0xf]  ;;  %277 = vst.msk [vmem:[#allocation2 + $0x20] sm:$0xff] %vm272_vm3, %v1468_v35  ;;  %v1305_v49 = vor.u32 %v1396_v47, %v1304_v46 }
  0x26   : > { %v1309_v27 = vor.u32 %v1395_v20, %v1306_v21  ;;  %278 = vst.msk [vmem:[#allocation2 + $0x28] sm:$0xff] %vm272_vm3, %v1468_v35 }
  0x27   : > { %279 = vst.msk [vmem:[#allocation2 + $0x30] sm:$0xff] %vm272_vm3, %v1468_v35 }
  0x28   : > { %280 = vst.msk [vmem:[#allocation2 + $0x38] sm:$0xff] %vm272_vm3, %v1468_v35  ;;  %v305_v53 = vld [vmem:[#allocation2] sm:$0xff] }
  0x29   : > { %652 = vmatpush.bf16.msra.mxu0 %v1397_v26  ;;  %1413 = vmatpush.bf16.msra.mxu2 %v1397_v26  ;;  %v1392_v26 = vld [vmem:[%s1528_s30 + $0xd4] sm:$0xf0]  ;;  %281 = vst.msk [vmem:[#allocation2 + $0x40] sm:$0xff] %vm272_vm3, %v1468_v35  ;;  %v306_v60 = vld [vmem:[#allocation2 + $0x8] sm:$0xff] }
  0x2a   : > { %1347 = vmatmul.msk.bf16.gmra.mxu1 %vm589_vm2, %v1197_v25  ;;  %1356 = vmatmul.msk.bf16.gmra.mxu3 %vm589_vm2, %v1269_v31  ;;  %v1288_v25 = vld [vmem:[%s1528_s30 + $0xd0] sm:$0xf]  ;;  %v1242_v31 = vld [vmem:[%s1528_s30 + $0x78] sm:$0xf0]  ;;  %282 = vst.msk [vmem:[#allocation2 + $0x48] sm:$0xff] %vm272_vm3, %v1468_v35 }
  0x2b   : > { %v1289_v29 = vor.u32 %v1392_v26, %v1288_v25  ;;  %283 = vst.msk [vmem:[#allocation2 + $0x50] sm:$0xff] %vm272_vm3, %v1468_v35  ;;  %v307_v6 = vld [vmem:[#allocation2 + $0x10] sm:$0xff]  ;;  %v308_v19 = vld [vmem:[#allocation2 + $0x18] sm:$0xff] }
  0x2c   : > { %653 = vmatmul.bf16.vlgmr.msra.gmra.mxu0 %v1185_v32  ;;  %693 = vmatmul.bf16.vlgmr.msra.gmra.mxu2 %v1249_v33  ;;  %v1245_v32 = vor.u32 %v1379_v30, %v1242_v31  ;;  %v1232_v33 = vld [vmem:[%s1528_s30 + $0x60] sm:$0xf]  ;;  %284 = vst.msk [vmem:[#allocation2 + $0x58] sm:$0xff] %vm272_vm3, %v1468_v35 }
  0x2d   : > { %285 = vst.msk [vmem:[#allocation2 + $0x60] sm:$0xff] %vm272_vm3, %v1468_v35 }
  0x2e   : > { %286 = vst.msk [vmem:[#allocation2 + $0x68] sm:$0xff] %vm272_vm3, %v1468_v35 }
  0x2f   : > { %287 = vst.msk [vmem:[#allocation2 + $0x70] sm:$0xff] %vm272_vm3, %v1468_v35 }
  0x30   : > { %288 = vst.msk [vmem:[#allocation2 + $0x78] sm:$0xff] %vm272_vm3, %v1468_v35 }
  0x31   : > { %289 = vst.msk [vmem:[#allocation2 + $0x80] sm:$0xff] %vm272_vm3, %v1468_v35 }
  0x32   : > { %290 = vst.msk [vmem:[#allocation2 + $0x88] sm:$0xff] %vm272_vm3, %v1468_v35 }
  0x33   : > { %291 = vst.msk [vmem:[#allocation2 + $0x90] sm:$0xff] %vm272_vm3, %v1468_v35 }
  0x34   : > { %292 = vst.msk [vmem:[#allocation2 + $0x98] sm:$0xff] %vm272_vm3, %v1468_v35 }
  0x35   : > { %293 = vst.msk [vmem:[#allocation2 + $0xa0] sm:$0xff] %vm272_vm3, %v1468_v35 }
  0x36   : > { %294 = vst.msk [vmem:[#allocation2 + $0xa8] sm:$0xff] %vm272_vm3, %v1468_v35 }
  0x37   : > { %295 = vst.msk [vmem:[#allocation2 + $0xb0] sm:$0xff] %vm272_vm3, %v1468_v35 }
  0x38   : > { %296 = vst.msk [vmem:[#allocation2 + $0xb8] sm:$0xff] %vm272_vm3, %v1468_v35 }
  0x39   : > { %297 = vst.msk [vmem:[#allocation2 + $0xc0] sm:$0xff] %vm272_vm3, %v1468_v35 }
  0x3a   : > { %1348 = vmatmul.msk.bf16.gmra.mxu1 %vm589_vm2, %v1205_v38  ;;  %1357 = vmatmul.msk.bf16.gmra.mxu3 %vm589_vm2, %v1277_v43  ;;  %v1233_v38 = vor.u32 %v1378_v34, %v1232_v33  ;;  %v1240_v43 = vld [vmem:[%s1528_s30 + $0x70] sm:$0xf]  ;;  %298 = vst.msk [vmem:[#allocation2 + $0xc8] sm:$0xff] %vm272_vm3, %v1468_v35  ;;  %v309_v33 = vld [vmem:[#allocation2 + $0x20] sm:$0xff] }
  0x3b   : > { %299 = vst.msk [vmem:[#allocation2 + $0xd0] sm:$0xff] %vm272_vm3, %v1468_v35  ;;  %v324_v30 = vld [vmem:[#allocation2 + $0x98] sm:$0xff] }
  0x3c   : > { %658 = vmatmul.bf16.gmra.mxu0 %v1193_v44  ;;  %698 = vmatmul.bf16.gmra.mxu2 %v1257_v45  ;;  %v1380_v44 = vld [vmem:[%s1528_s30 + $0x74] sm:$0xf0]  ;;  %300 = vst.msk [vmem:[#allocation2 + $0xd8] sm:$0xff] %vm272_vm3, %v1468_v35  ;;  %v325_v47 = vld [vmem:[#allocation2 + $0xa0] sm:$0xff] }
  0x3d   : > { %v1241_v48 = vor.u32 %v1380_v44, %v1240_v43  ;;  %301 = vst.msk [vmem:[#allocation2 + $0xe0] sm:$0xff] %vm272_vm3, %v1468_v35 }
  0x3e   : > { %302 = vst.msk [vmem:[#allocation2 + $0xe8] sm:$0xff] %vm272_vm3, %v1468_v35 }
  0x3f   : > { %303 = vst.msk [vmem:[#allocation2 + $0xf0] sm:$0xff] %vm272_vm3, %v1468_v35 }
  0x40   : > { %304 = vst.msk [vmem:[#allocation2 + $0xf8] sm:$0xff] %vm272_vm3, %v1468_v35 }
  0x4a   : > { %1349 = vmatmul.msk.bf16.gmra.mxu1 %vm589_vm2, %v1213_v50  ;;  %1358 = vmatmul.msk.bf16.gmra.mxu3 %vm589_vm2, %v1285_v55 }
  0x4c   : > { %663 = vmatmul.bf16.gmra.mxu0 %v1201_v56  ;;  %703 = vmatmul.bf16.gmra.mxu2 %v1265_v57 }
  0x5a   : > { %1350 = vmatmul.msk.bf16.gmra.mxu1 %vm589_vm2, %v1221_v62  ;;  %1359 = vmatmul.msk.bf16.gmra.mxu3 %vm589_vm2, %v1293_v3  ;;  %v1663_v62 = vld [vmem:[%s1813_s2] ss:$0 sm:$0xff] }
  0x5c   : > { %668 = vmatmul.bf16.gmra.mxu0 %v1209_v4  ;;  %708 = vmatmul.bf16.gmra.mxu2 %v1273_v5 }
  0x6a   : > { %1351 = vmatmul.msk.bf16.gmra.mxu1 %vm589_vm2, %v1229_v10  ;;  %1360 = vmatmul.msk.bf16.gmra.mxu3 %vm589_vm2, %v1301_v15 }
  0x6c   : > { %673 = vmatmul.bf16.gmra.mxu0 %v1217_v16  ;;  %713 = vmatmul.bf16.gmra.mxu2 %v1281_v17  ;;  %v323_v16 = vld [vmem:[#allocation2 + $0x90] sm:$0xff] }
  0x7a   : > { %1352 = vmatmul.msk.bf16.gmra.mxu1 %vm589_vm2, %v1237_v22  ;;  %1361 = vmatmul.msk.bf16.gmra.mxu3 %vm589_vm2, %v1309_v27 }
  0x7c   : > { %678 = vmatmul.bf16.gmra.mxu0 %v1225_v28  ;;  %718 = vmatmul.bf16.gmra.mxu2 %v1289_v29 }
  0x8a   : > { %1353 = vmatmul.msk.bf16.gmra.mxu1 %vm589_vm2, %v1245_v32 }
  0x8c   : > { %683 = vmatmul.bf16.gmra.mxu0 %v1233_v38  ;;  %723 = vmatmul.bf16.gmra.mxu2 %v1297_v39 }
  0x97   : > { %v743_v45 = vpop.f32.mrf.mxu1 }
  0x9a   : > { %1354 = vmatmul.msk.bf16.gmra.mxu1 %vm589_vm2, %v1253_v42 }
  0x9c   : > { %688 = vmatmul.bf16.gmra.mxu0 %v1241_v48  ;;  %728 = vmatmul.bf16.gmra.mxu2 %v1305_v49 }
  0x9d   : > { %v788_v52 = vpop.f32.mrf.mxu3 }
  0x9f   : > { %v745_v50 = vpop.f32.mrf.mxu1 }
  0xa5   : > { %v790_v59 = vpop.f32.mrf.mxu3 }
  0xa7   : > { %v748_v51 = vpop.f32.mrf.mxu1 }
  0xa9   : > { %v654_v54 = vpop.f32.mrf.mxu0 }
  0xaa   : > { %v744_v55 = vadd.f32 %v743_v45, %v654_v54 }
  0xac   : > { %v823_v56 = vadd.f32 %v744_v55, %v305_v53 }
  0xad   : > { %v793_v10 = vpop.f32.mrf.mxu3 }
  0xae   : > { %856 = vst.msk [vmem:[#allocation2] sm:$0xff] %vm272_vm3, %v823_v56 }
  0xaf   : > { %v750_v57 = vpop.f32.mrf.mxu1  ;;  %v1658_v58 = vpop.f32.mrf.mxu2 }
  0xb1   : > { %v656_v61 = vpop.f32.mrf.mxu0 }
  0xb2   : > { %v746_v63 = vadd.f32 %v745_v50, %v656_v61 }
  0xb4   : > { %v824_v0 = vadd.f32 %v746_v63, %v306_v60 }
  0xb5   : > { %v891_v1 = vld [vmem:[#allocation2] sm:$0xff]  ;;  %v795_v25 = vpop.f32.mrf.mxu3 }
  0xb6   : > { %v927_v2 = vadd.f32 %v1663_v62, %v891_v1  ;;  %857 = vst.msk [vmem:[#allocation2 + $0x8] sm:$0xff] %vm272_vm3, %v824_v0 }
  0xb7   : > { %v753_v3 = vpop.f32.mrf.mxu1  ;;  %v1668_v5 = vpop.f32.mrf.mxu2 }
  0xb8   : > { %v959_v4 = vmax.f32 %v927_v2, 0.0  ;;  %v326_v2 = vld [vmem:[#allocation2 + $0xa8] sm:$0xff] }
  0xb9   : > { %v659_v7 = vpop.f32.mrf.mxu0 }
  0xba   : > { %v991_v8 = vpack.c.bf16 %v959_v4, %v959_v4  ;;  %v749_v9 = vadd.f32 %v748_v51, %v659_v7  ;;  %v310_v51 = vld [vmem:[#allocation2 + $0x28] sm:$0xff] }
  0xbc   : > { %1024 = vst.msk [vmem:[%s1673_s23] sm:$0xf] %vm1023_vm4, %v991_v8  ;;  %v825_v11 = vadd.f32 %v749_v9, %v307_v6  ;;  %v311_v8 = vld [vmem:[#allocation2 + $0x30] sm:$0xff] }
  0xbd   : > { %v892_v12 = vld [vmem:[#allocation2 + $0x8] sm:$0xff]  ;;  %v798_v44 = vpop.f32.mrf.mxu3 }
  0xbe   : > { %v928_v13 = vadd.f32 %v1663_v62, %v892_v12  ;;  %858 = vst.msk [vmem:[#allocation2 + $0x10] sm:$0xff] %vm272_vm3, %v825_v11 }
  0xbf   : > { %v755_v14 = vpop.f32.mrf.mxu1  ;;  %v699_v17 = vpop.f32.mrf.mxu2 }
  0xc0   : > { %v960_v15 = vmax.f32 %v928_v13, 0.0  ;;  %v789_v18 = vadd.f32 %v788_v52, %v699_v17 }
  0xc1   : > { %v661_v20 = vpop.f32.mrf.mxu0 }
  0xc2   : > { %v992_v21 = vpack.c.bf16 %v960_v15, %v960_v15  ;;  %v751_v22 = vadd.f32 %v750_v57, %v661_v20  ;;  %v841_v23 = vadd.f32 %v789_v18, %v323_v16 }
  0xc4   : > { %1025 = vst.msk [vmem:[%s1673_s23 + $0x4] sm:$0xf] %vm1023_vm4, %v992_v21  ;;  %v826_v24 = vadd.f32 %v751_v22, %v308_v19  ;;  %v327_v21 = vld [vmem:[#allocation2 + $0xb0] sm:$0xff] }
  0xc5   : > { %v893_v26 = vld [vmem:[#allocation2 + $0x10] sm:$0xff]  ;;  %874 = vst.msk [vmem:[#allocation2 + $0x90] sm:$0xff] %vm272_vm3, %v841_v23  ;;  %v800_v4 = vpop.f32.mrf.mxu3 }
  0xc6   : > { %v929_v27 = vadd.f32 %v1663_v62, %v893_v26  ;;  %859 = vst.msk [vmem:[#allocation2 + $0x18] sm:$0xff] %vm272_vm3, %v826_v24 }
  0xc7   : > { %v758_v28 = vpop.f32.mrf.mxu1  ;;  %v701_v31 = vpop.f32.mrf.mxu2 }
  0xc8   : > { %v961_v29 = vmax.f32 %v929_v27, 0.0  ;;  %v791_v32 = vadd.f32 %v790_v59, %v701_v31 }
  0xc9   : > { %v664_v34 = vpop.f32.mrf.mxu0 }
  0xca   : > { %v993_v35 = vpack.c.bf16 %v961_v29, %v961_v29  ;;  %v754_v36 = vadd.f32 %v753_v3, %v664_v34  ;;  %v842_v37 = vadd.f32 %v791_v32, %v324_v30 }
  0xcc   : > { %1026 = vst.msk [vmem:[%s1673_s23 + $0x8] sm:$0xf] %vm1023_vm4, %v993_v35  ;;  %v909_v38 = vld [vmem:[#allocation2 + $0x90] sm:$0xff]  ;;  %v827_v39 = vadd.f32 %v754_v36, %v309_v33 }
  0xcd   : > { %v945_v40 = vadd.f32 %v1663_v62, %v909_v38  ;;  %v894_v41 = vld [vmem:[#allocation2 + $0x18] sm:$0xff]  ;;  %875 = vst.msk [vmem:[#allocation2 + $0x98] sm:$0xff] %vm272_vm3, %v842_v37  ;;  %v803_v29 = vpop.f32.mrf.mxu3 }
  0xce   : > { %v930_v42 = vadd.f32 %v1663_v62, %v894_v41  ;;  %860 = vst.msk [vmem:[#allocation2 + $0x20] sm:$0xff] %vm272_vm3, %v827_v39  ;;  %v328_v39 = vld [vmem:[#allocation2 + $0xb8] sm:$0xff] }
  0xcf   : > { %v760_v43 = vpop.f32.mrf.mxu1  ;;  %v977_v45 = vmax.f32 %v945_v40, 0.0  ;;  %v704_v48 = vpop.f32.mrf.mxu2 }
  0xd0   : > { %v962_v46 = vmax.f32 %v930_v42, 0.0  ;;  %v794_v50 = vadd.f32 %v793_v10, %v704_v48 }
  0xd1   : > { %v1009_v49 = vpack.c.bf16 %v977_v45, %v977_v45  ;;  %v666_v52 = vpop.f32.mrf.mxu0 }
  0xd2   : > { %v994_v53 = vpack.c.bf16 %v962_v46, %v962_v46  ;;  %v756_v54 = vadd.f32 %v755_v14, %v666_v52  ;;  %v843_v55 = vadd.f32 %v794_v50, %v325_v47 }
  0xd3   : > { %1042 = vst.msk [vmem:[%s1673_s23 + $0x48] sm:$0xf] %vm1023_vm4, %v1009_v49 }
  0xd4   : > { %1027 = vst.msk [vmem:[%s1673_s23 + $0xc] sm:$0xf] %vm1023_vm4, %v994_v53  ;;  %v910_v56 = vld [vmem:[#allocation2 + $0x98] sm:$0xff]  ;;  %v828_v57 = vadd.f32 %v756_v54, %v310_v51 }
  0xd5   : > { %v946_v59 = vadd.f32 %v1663_v62, %v910_v56  ;;  %v895_v60 = vld [vmem:[#allocation2 + $0x20] sm:$0xff]  ;;  %876 = vst.msk [vmem:[#allocation2 + $0xa0] sm:$0xff] %vm272_vm3, %v843_v55  ;;  %v805_v50 = vpop.f32.mrf.mxu3 }
  0xd6   : > { %v931_v61 = vadd.f32 %v1663_v62, %v895_v60  ;;  %861 = vst.msk [vmem:[#allocation2 + $0x28] sm:$0xff] %vm272_vm3, %v828_v57  ;;  %v329_v57 = vld [vmem:[#allocation2 + $0xc0] sm:$0xff] }
  0xd7   : > { %v763_v63 = vpop.f32.mrf.mxu1  ;;  %v978_v0 = vmax.f32 %v946_v59, 0.0  ;;  %v706_v3 = vpop.f32.mrf.mxu2 }
  0xd8   : > { %v963_v1 = vmax.f32 %v931_v61, 0.0  ;;  %v796_v7 = vadd.f32 %v795_v25, %v706_v3  ;;  %v312_v25 = vld [vmem:[#allocation2 + $0x38] sm:$0xff] }
  0xd9   : > { %v1010_v6 = vpack.c.bf16 %v978_v0, %v978_v0  ;;  %v669_v9 = vpop.f32.mrf.mxu0 }
  0xda   : > { %v995_v10 = vpack.c.bf16 %v963_v1, %v963_v1  ;;  %v759_v11 = vadd.f32 %v758_v28, %v669_v9  ;;  %v844_v12 = vadd.f32 %v796_v7, %v326_v2 }
  0xdb   : > { %1043 = vst.msk [vmem:[%s1673_s23 + $0x4c] sm:$0xf] %vm1023_vm4, %v1010_v6 }
  0xdc   : > { %1028 = vst.msk [vmem:[%s1673_s23 + $0x10] sm:$0xf] %vm1023_vm4, %v995_v10  ;;  %v911_v13 = vld [vmem:[#allocation2 + $0xa0] sm:$0xff]  ;;  %v829_v14 = vadd.f32 %v759_v11, %v311_v8 }
  0xdd   : > { %v947_v15 = vadd.f32 %v1663_v62, %v911_v13  ;;  %v896_v16 = vld [vmem:[#allocation2 + $0x28] sm:$0xff]  ;;  %877 = vst.msk [vmem:[#allocation2 + $0xa8] sm:$0xff] %vm272_vm3, %v844_v12  ;;  %v808_v11 = vpop.f32.mrf.mxu3 }
  0xde   : > { %v932_v17 = vadd.f32 %v1663_v62, %v896_v16  ;;  %862 = vst.msk [vmem:[#allocation2 + $0x30] sm:$0xff] %vm272_vm3, %v829_v14  ;;  %v330_v14 = vld [vmem:[#allocation2 + $0xc8] sm:$0xff] }
  0xdf   : > { %v765_v18 = vpop.f32.mrf.mxu1  ;;  %v979_v19 = vmax.f32 %v947_v15, 0.0  ;;  %v709_v22 = vpop.f32.mrf.mxu2 }
  0xe0   : > { %v964_v20 = vmax.f32 %v932_v17, 0.0  ;;  %v799_v24 = vadd.f32 %v798_v44, %v709_v22 }
  0xe1   : > { %v1011_v23 = vpack.c.bf16 %v979_v19, %v979_v19  ;;  %v671_v26 = vpop.f32.mrf.mxu0 }
  0xe2   : > { %v996_v27 = vpack.c.bf16 %v964_v20, %v964_v20  ;;  %v761_v28 = vadd.f32 %v760_v43, %v671_v26  ;;  %v845_v30 = vadd.f32 %v799_v24, %v327_v21  ;;  %v313_v43 = vld [vmem:[#allocation2 + $0x40] sm:$0xff] }
  0xe3   : > { %1044 = vst.msk [vmem:[%s1673_s23 + $0x50] sm:$0xf] %vm1023_vm4, %v1011_v23 }
  0xe4   : > { %1029 = vst.msk [vmem:[%s1673_s23 + $0x14] sm:$0xf] %vm1023_vm4, %v996_v27  ;;  %v912_v31 = vld [vmem:[#allocation2 + $0xa8] sm:$0xff]  ;;  %v830_v32 = vadd.f32 %v761_v28, %v312_v25 }
  0xe5   : > { %v948_v33 = vadd.f32 %v1663_v62, %v912_v31  ;;  %v897_v34 = vld [vmem:[#allocation2 + $0x30] sm:$0xff]  ;;  %878 = vst.msk [vmem:[#allocation2 + $0xb0] sm:$0xff] %vm272_vm3, %v845_v30 }
  0xe6   : > { %v933_v35 = vadd.f32 %v1663_v62, %v897_v34  ;;  %863 = vst.msk [vmem:[#allocation2 + $0x38] sm:$0xff] %vm272_vm3, %v830_v32  ;;  %v331_v31 = vld [vmem:[#allocation2 + $0xd0] sm:$0xff] }
  0xe7   : > { %v768_v36 = vpop.f32.mrf.mxu1  ;;  %v980_v37 = vmax.f32 %v948_v33, 0.0  ;;  %v711_v40 = vpop.f32.mrf.mxu2 }
  0xe8   : > { %v965_v38 = vmax.f32 %v933_v35, 0.0  ;;  %v801_v42 = vadd.f32 %v800_v4, %v711_v40  ;;  %v810_v33 = vpop.f32.mrf.mxu3 }
  0xe9   : > { %v1012_v41 = vpack.c.bf16 %v980_v37, %v980_v37  ;;  %v674_v44 = vpop.f32.mrf.mxu0 }
  0xea   : > { %v997_v45 = vpack.c.bf16 %v965_v38, %v965_v38  ;;  %v764_v46 = vadd.f32 %v763_v63, %v674_v44  ;;  %v846_v47 = vadd.f32 %v801_v42, %v328_v39  ;;  %v314_v63 = vld [vmem:[#allocation2 + $0x48] sm:$0xff] }
  0xeb   : > { %1045 = vst.msk [vmem:[%s1673_s23 + $0x54] sm:$0xf] %vm1023_vm4, %v1012_v41 }
  0xec   : > { %1030 = vst.msk [vmem:[%s1673_s23 + $0x18] sm:$0xf] %vm1023_vm4, %v997_v45  ;;  %v913_v48 = vld [vmem:[#allocation2 + $0xb0] sm:$0xff]  ;;  %v831_v49 = vadd.f32 %v764_v46, %v313_v43 }
  0xed   : > { %v949_v51 = vadd.f32 %v1663_v62, %v913_v48  ;;  %v898_v52 = vld [vmem:[#allocation2 + $0x38] sm:$0xff]  ;;  %879 = vst.msk [vmem:[#allocation2 + $0xb8] sm:$0xff] %vm272_vm3, %v846_v47 }
  0xee   : > { %v934_v53 = vadd.f32 %v1663_v62, %v898_v52  ;;  %864 = vst.msk [vmem:[#allocation2 + $0x40] sm:$0xff] %vm272_vm3, %v831_v49  ;;  %v332_v49 = vld [vmem:[#allocation2 + $0xd8] sm:$0xff] }
  0xef   : > { %v770_v54 = vpop.f32.mrf.mxu1  ;;  %v981_v55 = vmax.f32 %v949_v51, 0.0  ;;  %v714_v59 = vpop.f32.mrf.mxu2 }
  0xf0   : > { %v966_v56 = vmax.f32 %v934_v53, 0.0  ;;  %v804_v61 = vadd.f32 %v803_v29, %v714_v59  ;;  %v317_v53 = vld [vmem:[#allocation2 + $0x60] sm:$0xff] }
  0xf1   : > { %v1013_v60 = vpack.c.bf16 %v981_v55, %v981_v55  ;;  %v676_v0 = vpop.f32.mrf.mxu0 }
  0xf2   : > { %v998_v1 = vpack.c.bf16 %v966_v56, %v966_v56  ;;  %v766_v2 = vadd.f32 %v765_v18, %v676_v0  ;;  %v847_v3 = vadd.f32 %v804_v61, %v329_v57  ;;  %v315_v18 = vld [vmem:[#allocation2 + $0x50] sm:$0xff]  ;;  %v813_v56 = vpop.f32.mrf.mxu3 }
  0xf3   : > { %1046 = vst.msk [vmem:[%s1673_s23 + $0x58] sm:$0xf] %vm1023_vm4, %v1013_v60 }
  0xf4   : > { %1031 = vst.msk [vmem:[%s1673_s23 + $0x1c] sm:$0xf] %vm1023_vm4, %v998_v1  ;;  %v914_v4 = vld [vmem:[#allocation2 + $0xb8] sm:$0xff]  ;;  %v832_v6 = vadd.f32 %v766_v2, %v314_v63 }
  0xf5   : > { %v950_v7 = vadd.f32 %v1663_v62, %v914_v4  ;;  %v899_v8 = vld [vmem:[#allocation2 + $0x40] sm:$0xff]  ;;  %880 = vst.msk [vmem:[#allocation2 + $0xc0] sm:$0xff] %vm272_vm3, %v847_v3 }
  0xf6   : > { %v935_v9 = vadd.f32 %v1663_v62, %v899_v8  ;;  %865 = vst.msk [vmem:[#allocation2 + $0x48] sm:$0xff] %vm272_vm3, %v832_v6  ;;  %v333_v6 = vld [vmem:[#allocation2 + $0xe0] sm:$0xff] }
  0xf7   : > { %v773_v10 = vpop.f32.mrf.mxu1  ;;  %v982_v12 = vmax.f32 %v950_v7, 0.0  ;;  %v716_v15 = vpop.f32.mrf.mxu2 }
  0xf8   : > { %v967_v13 = vmax.f32 %v935_v9, 0.0  ;;  %v806_v17 = vadd.f32 %v805_v50, %v716_v15 }
  0xf9   : > { %v1014_v16 = vpack.c.bf16 %v982_v12, %v982_v12  ;;  %v679_v19 = vpop.f32.mrf.mxu0 }
  0xfa   : > { %v999_v20 = vpack.c.bf16 %v967_v13, %v967_v13  ;;  %v769_v21 = vadd.f32 %v768_v36, %v679_v19  ;;  %v848_v22 = vadd.f32 %v806_v17, %v330_v14  ;;  %v316_v36 = vld [vmem:[#allocation2 + $0x58] sm:$0xff] }
  0xfb   : > { %1047 = vst.msk [vmem:[%s1673_s23 + $0x5c] sm:$0xf] %vm1023_vm4, %v1014_v16  ;;  %v815_v16 = vpop.f32.mrf.mxu3 }
  0xfc   : > { %1032 = vst.msk [vmem:[%s1673_s23 + $0x20] sm:$0xf] %vm1023_vm4, %v999_v20  ;;  %v915_v23 = vld [vmem:[#allocation2 + $0xc0] sm:$0xff]  ;;  %v833_v24 = vadd.f32 %v769_v21, %v315_v18 }
  0xfd   : > { %v951_v25 = vadd.f32 %v1663_v62, %v915_v23  ;;  %v900_v26 = vld [vmem:[#allocation2 + $0x48] sm:$0xff]  ;;  %881 = vst.msk [vmem:[#allocation2 + $0xc8] sm:$0xff] %vm272_vm3, %v848_v22  ;;  %v321_v21 = vld [vmem:[#allocation2 + $0x80] sm:$0xff] }
  0xfe   : > { %v936_v27 = vadd.f32 %v1663_v62, %v900_v26  ;;  %866 = vst.msk [vmem:[#allocation2 + $0x50] sm:$0xff] %vm272_vm3, %v833_v24  ;;  %v334_v26 = vld [vmem:[#allocation2 + $0xe8] sm:$0xff] }
  0xff   : > { %v775_v28 = vpop.f32.mrf.mxu1  ;;  %v983_v29 = vmax.f32 %v951_v25, 0.0  ;;  %v719_v32 = vpop.f32.mrf.mxu2 }
 0x100   : > { %v968_v30 = vmax.f32 %v936_v27, 0.0  ;;  %v809_v35 = vadd.f32 %v808_v11, %v719_v32 }
 0x101   : > { %v1015_v34 = vpack.c.bf16 %v983_v29, %v983_v29  ;;  %v681_v37 = vpop.f32.mrf.mxu0 }
 0x102   : > { %v1000_v38 = vpack.c.bf16 %v968_v30, %v968_v30  ;;  %v771_v39 = vadd.f32 %v770_v54, %v681_v37  ;;  %v849_v40 = vadd.f32 %v809_v35, %v331_v31  ;;  %v319_v31 = vld [vmem:[#allocation2 + $0x70] sm:$0xff] }
 0x103   : > { %1048 = vst.msk [vmem:[%s1673_s23 + $0x60] sm:$0xf] %vm1023_vm4, %v1015_v34 }
 0x104   : > { %1033 = vst.msk [vmem:[%s1673_s23 + $0x24] sm:$0xf] %vm1023_vm4, %v1000_v38  ;;  %v916_v41 = vld [vmem:[#allocation2 + $0xc8] sm:$0xff]  ;;  %v834_v42 = vadd.f32 %v771_v39, %v316_v36 }
 0x105   : > { %v952_v43 = vadd.f32 %v1663_v62, %v916_v41  ;;  %v901_v44 = vld [vmem:[#allocation2 + $0x50] sm:$0xff]  ;;  %882 = vst.msk [vmem:[#allocation2 + $0xd0] sm:$0xff] %vm272_vm3, %v849_v40  ;;  %v818_v40 = vpop.f32.mrf.mxu3  ;;  %v322_v41 = vld [vmem:[#allocation2 + $0x88] sm:$0xff] }
 0x106   : > { %v937_v45 = vadd.f32 %v1663_v62, %v901_v44  ;;  %867 = vst.msk [vmem:[#allocation2 + $0x58] sm:$0xff] %vm272_vm3, %v834_v42 }
 0x107   : > { %v778_v46 = vpop.f32.mrf.mxu1  ;;  %v984_v47 = vmax.f32 %v952_v43, 0.0  ;;  %v721_v50 = vpop.f32.mrf.mxu2 }
 0x108   : > { %v969_v48 = vmax.f32 %v937_v45, 0.0  ;;  %v811_v52 = vadd.f32 %v810_v33, %v721_v50 }
 0x109   : > { %v1016_v51 = vpack.c.bf16 %v984_v47, %v984_v47  ;;  %v684_v54 = vpop.f32.mrf.mxu0 }
 0x10a   : > { %v1001_v55 = vpack.c.bf16 %v969_v48, %v969_v48  ;;  %v774_v57 = vadd.f32 %v773_v10, %v684_v54  ;;  %v850_v59 = vadd.f32 %v811_v52, %v332_v49  ;;  %v318_v10 = vld [vmem:[#allocation2 + $0x68] sm:$0xff] }
 0x10b   : > { %1049 = vst.msk [vmem:[%s1673_s23 + $0x64] sm:$0xf] %vm1023_vm4, %v1016_v51  ;;  %v320_v51 = vld [vmem:[#allocation2 + $0x78] sm:$0xff] }
 0x10c   : > { %1034 = vst.msk [vmem:[%s1673_s23 + $0x28] sm:$0xf] %vm1023_vm4, %v1001_v55  ;;  %v917_v60 = vld [vmem:[#allocation2 + $0xd0] sm:$0xff]  ;;  %v835_v61 = vadd.f32 %v774_v57, %v317_v53 }
 0x10d   : > { %v953_v63 = vadd.f32 %v1663_v62, %v917_v60  ;;  %v902_v0 = vld [vmem:[#allocation2 + $0x58] sm:$0xff]  ;;  %883 = vst.msk [vmem:[#allocation2 + $0xd8] sm:$0xff] %vm272_vm3, %v850_v59 }
 0x10e   : > { %v938_v1 = vadd.f32 %v1663_v62, %v902_v0  ;;  %868 = vst.msk [vmem:[#allocation2 + $0x60] sm:$0xff] %vm272_vm3, %v835_v61 }
 0x10f   : > { %v780_v2 = vpop.f32.mrf.mxu1  ;;  %v985_v3 = vmax.f32 %v953_v63, 0.0  ;;  %v724_v7 = vpop.f32.mrf.mxu2 }
 0x110   : > { %v970_v4 = vmax.f32 %v938_v1, 0.0  ;;  %v814_v9 = vadd.f32 %v813_v56, %v724_v7 }
 0x111   : > { %v1017_v8 = vpack.c.bf16 %v985_v3, %v985_v3  ;;  %v686_v11 = vpop.f32.mrf.mxu0  ;;  %v336_v3 = vld [vmem:[#allocation2 + $0xf8] sm:$0xff] }
 0x112   : > { %v1002_v12 = vpack.c.bf16 %v970_v4, %v970_v4  ;;  %v776_v13 = vadd.f32 %v775_v28, %v686_v11  ;;  %v851_v14 = vadd.f32 %v814_v9, %v333_v6 }
 0x113   : > { %1050 = vst.msk [vmem:[%s1673_s23 + $0x68] sm:$0xf] %vm1023_vm4, %v1017_v8 }
 0x114   : > { %1035 = vst.msk [vmem:[%s1673_s23 + $0x2c] sm:$0xf] %vm1023_vm4, %v1002_v12  ;;  %v918_v15 = vld [vmem:[#allocation2 + $0xd8] sm:$0xff]  ;;  %v836_v17 = vadd.f32 %v776_v13, %v318_v10 }
 0x115   : > { %v954_v18 = vadd.f32 %v1663_v62, %v918_v15  ;;  %v903_v19 = vld [vmem:[#allocation2 + $0x60] sm:$0xff]  ;;  %884 = vst.msk [vmem:[#allocation2 + $0xe0] sm:$0xff] %vm272_vm3, %v851_v14 }
 0x116   : > { %v939_v20 = vadd.f32 %v1663_v62, %v903_v19  ;;  %869 = vst.msk [vmem:[#allocation2 + $0x68] sm:$0xff] %vm272_vm3, %v836_v17 }
 0x117   : > { %v783_v22 = vpop.f32.mrf.mxu1  ;;  %v986_v23 = vmax.f32 %v954_v18, 0.0  ;;  %v726_v27 = vpop.f32.mrf.mxu2 }
 0x118   : > { %v784_v24 = vadd.f32 %v783_v22, %v1658_v58  ;;  %v971_v25 = vmax.f32 %v939_v20, 0.0  ;;  %v816_v30 = vadd.f32 %v815_v16, %v726_v27 }
 0x119   : > { %v1018_v28 = vpack.c.bf16 %v986_v23, %v986_v23  ;;  %v689_v32 = vpop.f32.mrf.mxu0 }
 0x11a   : > { %v839_v29 = vadd.f32 %v784_v24, %v321_v21  ;;  %v1003_v33 = vpack.c.bf16 %v971_v25, %v971_v25  ;;  %v779_v34 = vadd.f32 %v778_v46, %v689_v32  ;;  %v852_v35 = vadd.f32 %v816_v30, %v334_v26  ;;  %v335_v46 = vld [vmem:[#allocation2 + $0xf0] sm:$0xff] }
 0x11b   : > { %1051 = vst.msk [vmem:[%s1673_s23 + $0x6c] sm:$0xf] %vm1023_vm4, %v1018_v28 }
 0x11c   : > { %1036 = vst.msk [vmem:[%s1673_s23 + $0x30] sm:$0xf] %vm1023_vm4, %v1003_v33  ;;  %v919_v36 = vld [vmem:[#allocation2 + $0xe0] sm:$0xff]  ;;  %v837_v37 = vadd.f32 %v779_v34, %v319_v31 }
 0x11d   : > { %v955_v38 = vadd.f32 %v1663_v62, %v919_v36  ;;  %v904_v58 = vld [vmem:[#allocation2 + $0x68] sm:$0xff]  ;;  %872 = vst.msk [vmem:[#allocation2 + $0x80] sm:$0xff] %vm272_vm3, %v839_v29 }
 0x11e   : > { %v940_v39 = vadd.f32 %v1663_v62, %v904_v58  ;;  %885 = vst.msk [vmem:[#allocation2 + $0xe8] sm:$0xff] %vm272_vm3, %v852_v35 }
 0x11f   : > { %v785_v42 = vpop.f32.mrf.mxu1  ;;  %v987_v43 = vmax.f32 %v955_v38, 0.0  ;;  %870 = vst.msk [vmem:[#allocation2 + $0x70] sm:$0xff] %vm272_vm3, %v837_v37  ;;  %v729_v47 = vpop.f32.mrf.mxu2 }
 0x120   : > { %v786_v44 = vadd.f32 %v785_v42, %v1668_v5  ;;  %v972_v45 = vmax.f32 %v940_v39, 0.0  ;;  %v819_v50 = vadd.f32 %v818_v40, %v729_v47 }
 0x121   : > { %v1019_v48 = vpack.c.bf16 %v987_v43, %v987_v43  ;;  %v691_v52 = vpop.f32.mrf.mxu0 }
 0x122   : > { %v840_v49 = vadd.f32 %v786_v44, %v322_v41  ;;  %v1004_v53 = vpack.c.bf16 %v972_v45, %v972_v45  ;;  %v781_v54 = vadd.f32 %v780_v2, %v691_v52  ;;  %v853_v55 = vadd.f32 %v819_v50, %v335_v46  ;;  %v820_v2 = vpop.f32.mrf.mxu3 }
 0x123   : > { %1052 = vst.msk [vmem:[%s1673_s23 + $0x70] sm:$0xf] %vm1023_vm4, %v1019_v48 }
 0x124   : > { %1037 = vst.msk [vmem:[%s1673_s23 + $0x34] sm:$0xf] %vm1023_vm4, %v1004_v53  ;;  %v907_v56 = vld [vmem:[#allocation2 + $0x80] sm:$0xff]  ;;  %v838_v57 = vadd.f32 %v781_v54, %v320_v51 }
 0x125   : > { %v943_v59 = vadd.f32 %v1663_v62, %v907_v56  ;;  %v920_v5 = vld [vmem:[#allocation2 + $0xe8] sm:$0xff]  ;;  %873 = vst.msk [vmem:[#allocation2 + $0x88] sm:$0xff] %vm272_vm3, %v840_v49 }
 0x126   : > { %v956_v60 = vadd.f32 %v1663_v62, %v920_v5  ;;  %v905_v61 = vld [vmem:[#allocation2 + $0x70] sm:$0xff]  ;;  %886 = vst.msk [vmem:[#allocation2 + $0xf0] sm:$0xff] %vm272_vm3, %v853_v55 }
 0x127   : > { %v975_v63 = vmax.f32 %v943_v59, 0.0  ;;  %v941_v0 = vadd.f32 %v1663_v62, %v905_v61  ;;  %871 = vst.msk [vmem:[#allocation2 + $0x78] sm:$0xff] %vm272_vm3, %v838_v57  ;;  %v731_v4 = vpop.f32.mrf.mxu2 }
 0x128   : > { %v988_v1 = vmax.f32 %v956_v60, 0.0  ;;  %v821_v8 = vadd.f32 %v820_v2, %v731_v4 }
 0x129   : > { %v1007_v6 = vpack.c.bf16 %v975_v63, %v975_v63  ;;  %v973_v7 = vmax.f32 %v941_v0, 0.0 }
 0x12a   : > { %v1020_v9 = vpack.c.bf16 %v988_v1, %v988_v1  ;;  %v854_v11 = vadd.f32 %v821_v8, %v336_v3 }
 0x12b   : > { %1040 = vst.msk [vmem:[%s1673_s23 + $0x40] sm:$0xf] %vm1023_vm4, %v1007_v6  ;;  %v1005_v10 = vpack.c.bf16 %v973_v7, %v973_v7 }
 0x12c   : > { %1053 = vst.msk [vmem:[%s1673_s23 + $0x74] sm:$0xf] %vm1023_vm4, %v1020_v9  ;;  %v908_v12 = vld [vmem:[#allocation2 + $0x88] sm:$0xff] }
 0x12d   : > { %1038 = vst.msk [vmem:[%s1673_s23 + $0x38] sm:$0xf] %vm1023_vm4, %v1005_v10  ;;  %v944_v13 = vadd.f32 %v1663_v62, %v908_v12  ;;  %v921_v14 = vld [vmem:[#allocation2 + $0xf0] sm:$0xff] }
 0x12e   : > { %v957_v15 = vadd.f32 %v1663_v62, %v921_v14  ;;  %v906_v16 = vld [vmem:[#allocation2 + $0x78] sm:$0xff]  ;;  %887 = vst.msk [vmem:[#allocation2 + $0xf8] sm:$0xff] %vm272_vm3, %v854_v11 }
 0x12f   : > { %v976_v17 = vmax.f32 %v944_v13, 0.0  ;;  %v942_v18 = vadd.f32 %v1663_v62, %v906_v16 }
 0x130   : > { %v989_v19 = vmax.f32 %v957_v15, 0.0 }
 0x131   : > { %v1008_v20 = vpack.c.bf16 %v976_v17, %v976_v17  ;;  %v974_v21 = vmax.f32 %v942_v18, 0.0 }
 0x132   : > { %v1021_v22 = vpack.c.bf16 %v989_v19, %v989_v19 }
 0x133   : > { %1041 = vst.msk [vmem:[%s1673_s23 + $0x44] sm:$0xf] %vm1023_vm4, %v1008_v20  ;;  %v1006_v23 = vpack.c.bf16 %v974_v21, %v974_v21 }
 0x134   : > { %1054 = vst.msk [vmem:[%s1673_s23 + $0x78] sm:$0xf] %vm1023_vm4, %v1021_v22 }
 0x135   : > { %1039 = vst.msk [vmem:[%s1673_s23 + $0x3c] sm:$0xf] %vm1023_vm4, %v1006_v23  ;;  %v922_v24 = vld [vmem:[#allocation2 + $0xf8] sm:$0xff] }
 0x136   : > { %v958_v25 = vadd.f32 %v1663_v62, %v922_v24 }
 0x138   : > { %v990_v26 = vmax.f32 %v958_v25, 0.0 }
 0x13a   : > { %v1022_v27 = vpack.c.bf16 %v990_v26, %v990_v26 }
 0x13c   : > { %1055 = vst.msk [vmem:[%s1673_s23 + $0x7c] sm:$0xf] %vm1023_vm4, %v1022_v27 }
 0x13d PF: > { %s13_s14 = sadd.s32 1, %s1465_s14   ;;  %s1815_s12 = smov %s1461_s13 }
 0x13e   : > { %p10_p5 = scmp.ge.s32.totalorder %s13_s14, 6   ;;  %s1816_s13 = smov %s1818_s15 }
 0x140   :  { %12 = sbr.rel (!%p10_p5) target bundleno = 2 (0x2), region = 76 }

</bundles_post_ra>
